<compile_context>
chip_gen: v7x
topology: tpu7x:2x2x1
jax: 0.10.0
libtpu: 0.0.40
codegen_flags: <defaults>
</compile_context>

<pallas_src>
import math

import jax
import jax.numpy as jnp
from jax.experimental import pallas as pl
from jax.experimental.pallas import tpu as pltpu


def _round_up(a, m):
    return (a + m - 1) // m * m


def _num_tensorcores():
    """Best-effort TensorCores-per-chip (2 on megacore chips like v7x, else 1)."""
    try:
        info = pltpu.get_tpu_info()
        for attr in ("num_cores", "core_count", "num_tensorcores"):
            v = getattr(info, attr, None)
            if isinstance(v, int) and v > 0:
                return v
    except Exception:
        pass
    try:
        kind = (getattr(jax.devices()[0], "device_kind", "") or "").lower()
        if any(t in kind for t in ("v7", "v4", "v5p")):
            return 2
    except Exception:
        pass
    return 1


def _make_mlp_kernel(h_real, eps, compute_dtype):
    inv_h = 1.0 / float(h_real)

    def kernel(x_ref, w1_ref, b1_ref, g_ref, beta_ref, w2_ref, b2_ref, o_ref):
        # x arrives in VMEM as f32 (HBM only ever sees the original array);
        # cast in-VPU right before feeding the MXU. W1 was pre-cast once.
        x = x_ref[...].astype(compute_dtype)

        # ---- Linear 1: (Bt, D) @ (D, Hp) + (1, Hp); f32 accumulation on MXU ----
        h = jnp.dot(x, w1_ref[...], preferred_element_type=jnp.float32) + b1_ref[...]

        # ---- LayerNorm over the REAL hidden width (padded columns are exactly
        #      zero), single-pass stats: var = E[h^2] - mean^2 ----
        mean = jnp.sum(h, axis=-1, keepdims=True) * inv_h
        mean_sq = jnp.sum(h * h, axis=-1, keepdims=True) * inv_h
        var = jnp.maximum(mean_sq - mean * mean, 0.0)
        h = (h - mean) * jax.lax.rsqrt(var + eps)
        # gamma/beta are zero-padded, so the padded lanes return to exactly 0.
        h = h * g_ref[...] + beta_ref[...]

        # ---- ReLU ----
        h = jnp.maximum(h, 0.0)

        # ---- Dropout: identity at inference ----
        # TODO(synk): training-mode dropout (p=0.2) would need pltpu.prng_* masking.

        # ---- Linear 2 (tiny K, keep f32): (Bt, Hp) @ (Hp, Cp) + (1, Cp) ----
        out = jnp.dot(h, w2_ref[...], preferred_element_type=jnp.float32) + b2_ref[...]
        o_ref[...] = out.astype(o_ref.dtype)

    return kernel


def static_model_mlp_forward(x, params, *, batch_tile=1024, bf16_first_matmul=True,
                             return_padded=False):
    """x: (B, input_size) f32 -> (B, num_classes) f32.

    If return_padded=True, returns the lane-dense (B, 128) result and lets the
    consumer slice the first num_classes columns lazily (saves a full output pass).
    """
    w1, b1, gamma, beta, w2, b2 = params
    B, D = x.shape
    H = w1.shape[1]
    C = w2.shape[1]

    # ---- one-time (tiny) parameter prep: lane-dense H and C ----
    H_pad = _round_up(H, 128)
    C_pad = _round_up(C, 128)
    if H_pad != H:
        w1 = jnp.pad(w1, ((0, 0), (0, H_pad - H)))
        b1 = jnp.pad(b1, ((0, 0), (0, H_pad - H)))
        gamma = jnp.pad(gamma, ((0, 0), (0, H_pad - H)))
        beta = jnp.pad(beta, ((0, 0), (0, H_pad - H)))
        w2 = jnp.pad(w2, ((0, H_pad - H), (0, 0)))
    if C_pad != C:
        w2 = jnp.pad(w2, ((0, 0), (0, C_pad - C)))
        b2 = jnp.pad(b2, ((0, 0), (0, C_pad - C)))

    compute_dtype = jnp.bfloat16 if bf16_first_matmul else jnp.float32
    if bf16_first_matmul:
        w1 = w1.astype(jnp.bfloat16)  # static weights: one-time tiny cast

    # ---- batch tiling: no wrapper pad/cast of x; Pallas masks the partial
    #      last tile. Split the grid only if this chip actually has >1 TC. ----
    num_cores = _num_tensorcores()
    bt = min(batch_tile, B)
    if num_cores > 1:
        per_core = -(-B // num_cores)  # cdiv: one grid step per core when possible
        bt = min(bt, max(8, _round_up(per_core, 8)))
    if bt >= B:
        bt = B                      # single full-batch block (no alignment needed)
        grid = (1,)
    else:
        bt = max(8, (bt // 8) * 8)  # multiple tiles: sublane-aligned
        grid = (pl.cdiv(B, bt),)

    kernel = _make_mlp_kernel(H, 1e-5, compute_dtype)

    w1_bytes = 2 if bf16_first_matmul else 4
    cost = pl.CostEstimate(
        flops=2 * B * (D * H_pad + H_pad * C_pad),
        transcendentals=B,  # one rsqrt per row
        bytes_accessed=B * D * 4 + D * H_pad * w1_bytes
        + (3 * H_pad + H_pad * C_pad + C_pad) * 4 + B * C_pad * 4,
    )

    # Rough double-buffered VMEM footprint; only force a limit if we would
    # exceed the most conservative (v5e, 16 MiB) scoped default.
    vmem_est = 2 * (bt * D * 4 + bt * C_pad * 4) + 2 * (
        D * H_pad * w1_bytes + H_pad * C_pad * 4 + 4 * C_pad * 4 + 3 * H_pad * 4)
    compiler_kwargs = dict(dimension_semantics=("parallel",))
    if vmem_est > 12 * 1024 * 1024:
        compiler_kwargs["vmem_limit_bytes"] = int(vmem_est * 1.5)

    out = pl.pallas_call(
        kernel,
        out_shape=jax.ShapeDtypeStruct((B, C_pad), jnp.float32),
        grid_spec=pltpu.PrefetchScalarGridSpec(
            num_scalar_prefetch=0,
            grid=grid,
            in_specs=[
                pl.BlockSpec((bt, D), lambda i: (i, 0)),         # x tile (streamed f32)
                # grid-invariant parameter blocks (tiny; default buffering kept
                # for lowering robustness — single-buffering them saves only
                # ~0.2 MiB of VMEM here)
                pl.BlockSpec((D, H_pad), lambda i: (0, 0)),      # W1 (bf16)
                pl.BlockSpec((1, H_pad), lambda i: (0, 0)),      # b1
                pl.BlockSpec((1, H_pad), lambda i: (0, 0)),      # LN gamma
                pl.BlockSpec((1, H_pad), lambda i: (0, 0)),      # LN beta
                pl.BlockSpec((H_pad, C_pad), lambda i: (0, 0)),  # W2 (lane-padded)
                pl.BlockSpec((1, C_pad), lambda i: (0, 0)),      # b2 (lane-padded)
            ],
            out_specs=pl.BlockSpec((bt, C_pad), lambda i: (i, 0)),
        ),
        compiler_params=pltpu.CompilerParams(**compiler_kwargs),
        cost_estimate=cost,
    )(x, w1, b1, gamma, beta, w2, b2)

    if return_padded:
        return out            # (B, 128) lane-dense; consumer slices lazily
    return out[:, :C]


def init_params(key, input_size=640, intermediate_dim=64, num_classes=15):
    """He (Kaiming) uniform init matching initialize_weights():
       bound = sqrt(6 / fan_in) (relu gain); biases zero; LN gamma=1, beta=0."""
    k1, k2 = jax.random.split(key, 2)

    bound1 = math.sqrt(6.0 / input_size)
    w1 = jax.random.uniform(k1, (input_size, intermediate_dim),
                            minval=-bound1, maxval=bound1, dtype=jnp.float32)
    b1 = jnp.zeros((1, intermediate_dim), dtype=jnp.float32)

    gamma = jnp.ones((1, intermediate_dim), dtype=jnp.float32)
    beta = jnp.zeros((1, intermediate_dim), dtype=jnp.float32)

    bound2 = math.sqrt(6.0 / intermediate_dim)
    w2 = jax.random.uniform(k2, (intermediate_dim, num_classes),
                            minval=-bound2, maxval=bound2, dtype=jnp.float32)
    b2 = jnp.zeros((1, num_classes), dtype=jnp.float32)

    return (w1, b1, gamma, beta, w2, b2)


def reference_forward(x, params, bf16_first_matmul=True):
    """Plain-JAX reference mirroring the kernel's numerics (same input casts)."""
    w1, b1, gamma, beta, w2, b2 = params
    if bf16_first_matmul:
        x = x.astype(jnp.bfloat16).astype(jnp.float32)
        w1 = w1.astype(jnp.bfloat16).astype(jnp.float32)
    h = x @ w1 + b1
    mean = jnp.mean(h, axis=-1, keepdims=True)
    var = jnp.mean((h - mean) ** 2, axis=-1, keepdims=True)
    h = (h - mean) / jnp.sqrt(var + 1e-5)
    h = h * gamma + beta
    h = jnp.maximum(h, 0.0)
    return h @ w2 + b2


if __name__ == "__main__":
    key = jax.random.PRNGKey(0)
    k_x, k_p = jax.random.split(key)

    batch = 64
    input_size = 640
    intermediate_dim = 64
    num_classes = 15

    x = jax.random.normal(k_x, (batch, input_size), dtype=jnp.float32)
    params = init_params(k_p, input_size, intermediate_dim, num_classes)

    out = static_model_mlp_forward(x, params)
    out = jax.block_until_ready(out)

    ref = reference_forward(x, params, bf16_first_matmul=True)
    assert out.shape == (batch, num_classes)
    max_err = float(jnp.max(jnp.abs(out - ref)))
    assert jnp.allclose(out, ref, atol=2e-3, rtol=2e-3), \
        f"mismatch vs reference (max abs err {max_err})"

    print("KERNEL_OK")
</pallas_src>

<mosaic_0001>
module attributes {stable_mosaic.version = 11 : i64} {
  func.func @kernel(%arg0: i32, %arg1: memref<64x640xf32, #tpu.memory_space<vmem>>, %arg2: memref<640x128xbf16, #tpu.memory_space<vmem>>, %arg3: memref<1x128xf32, #tpu.memory_space<vmem>>, %arg4: memref<1x128xf32, #tpu.memory_space<vmem>>, %arg5: memref<1x128xf32, #tpu.memory_space<vmem>>, %arg6: memref<128x128xf32, #tpu.memory_space<vmem>>, %arg7: memref<1x128xf32, #tpu.memory_space<vmem>>, %arg8: memref<64x128xf32, #tpu.memory_space<vmem>>) attributes {dimension_semantics = [#tpu.dimension_semantics<parallel>], iteration_bounds = array<i64: 1>, scalar_prefetch = 0 : i64, scratch_operands = 0 : i64, tpu.core_type = #tpu.core_type<tc>, window_params = [{transform_indices = @transform_0, window_bounds = array<i64: 64, 640>}, {pipeline_mode = #tpu.pipeline_mode<synchronous>, transform_indices = @transform_1, window_bounds = array<i64: 640, 128>}, {pipeline_mode = #tpu.pipeline_mode<synchronous>, transform_indices = @transform_2, window_bounds = array<i64: 1, 128>}, {pipeline_mode = #tpu.pipeline_mode<synchronous>, transform_indices = @transform_3, window_bounds = array<i64: 1, 128>}, {pipeline_mode = #tpu.pipeline_mode<synchronous>, transform_indices = @transform_4, window_bounds = array<i64: 1, 128>}, {pipeline_mode = #tpu.pipeline_mode<synchronous>, transform_indices = @transform_5, window_bounds = array<i64: 128, 128>}, {pipeline_mode = #tpu.pipeline_mode<synchronous>, transform_indices = @transform_6, window_bounds = array<i64: 1, 128>}, {transform_indices = @transform_7, window_bounds = array<i64: 64, 128>}]} {
    %c0 = arith.constant 0 : index
    %c0_0 = arith.constant 0 : index
    %0 = vector.load %arg1[%c0, %c0_0] : memref<64x640xf32, #tpu.memory_space<vmem>>, vector<64x640xf32>
    %1 = arith.truncf %0 : vector<64x640xf32> to vector<64x640xbf16>
    %c0_1 = arith.constant 0 : index
    %c0_2 = arith.constant 0 : index
    %2 = vector.load %arg2[%c0_1, %c0_2] : memref<640x128xbf16, #tpu.memory_space<vmem>>, vector<640x128xbf16>
    %cst = arith.constant dense<0.000000e+00> : vector<64x128xf32>
    %3 = tpu.matmul %1, %2, %cst {dimension_numbers = #tpu.dot_dimension_numbers<[1], [0], [0], [1], [0, 0, 1, 1], [], []>} : vector<64x640xbf16>, vector<640x128xbf16>, vector<64x128xf32> -> vector<64x128xf32>
    %c0_3 = arith.constant 0 : index
    %c0_4 = arith.constant 0 : index
    %4 = vector.load %arg3[%c0_3, %c0_4] : memref<1x128xf32, #tpu.memory_space<vmem>>, vector<1x128xf32>
    %5 = vector.broadcast %4 : vector<1x128xf32> to vector<64x128xf32>
    %6 = arith.addf %3, %5 : vector<64x128xf32>
    %cst_5 = arith.constant dense<0.000000e+00> : vector<64xf32>
    %7 = vector.multi_reduction <add>, %6, %cst_5 [1] : vector<64x128xf32> to vector<64xf32>
    %8 = vector.shape_cast %7 : vector<64xf32> to vector<64x1xf32>
    %cst_6 = arith.constant 1.562500e-02 : f32
    %9 = vector.broadcast %cst_6 : f32 to vector<64x1xf32>
    %10 = arith.mulf %8, %9 : vector<64x1xf32>
    %11 = arith.mulf %6, %6 : vector<64x128xf32>
    %cst_7 = arith.constant dense<0.000000e+00> : vector<64xf32>
    %12 = vector.multi_reduction <add>, %11, %cst_7 [1] : vector<64x128xf32> to vector<64xf32>
    %13 = vector.shape_cast %12 : vector<64xf32> to vector<64x1xf32>
    %cst_8 = arith.constant 1.562500e-02 : f32
    %14 = vector.broadcast %cst_8 : f32 to vector<64x1xf32>
    %15 = arith.mulf %13, %14 : vector<64x1xf32>
    %16 = arith.mulf %10, %10 : vector<64x1xf32>
    %17 = arith.subf %15, %16 : vector<64x1xf32>
    %cst_9 = arith.constant 0.000000e+00 : f32
    %18 = vector.broadcast %cst_9 : f32 to vector<64x1xf32>
    %19 = arith.maximumf %17, %18 : vector<64x1xf32>
    %20 = vector.broadcast %10 : vector<64x1xf32> to vector<64x128xf32>
    %21 = arith.subf %6, %20 : vector<64x128xf32>
    %cst_10 = arith.constant 9.99999974E-6 : f32
    %22 = vector.broadcast %cst_10 : f32 to vector<64x1xf32>
    %23 = arith.addf %19, %22 : vector<64x1xf32>
    %24 = math.rsqrt %23 : vector<64x1xf32>
    %25 = vector.broadcast %24 : vector<64x1xf32> to vector<64x128xf32>
    %26 = arith.mulf %21, %25 : vector<64x128xf32>
    %c0_11 = arith.constant 0 : index
    %c0_12 = arith.constant 0 : index
    %27 = vector.load %arg4[%c0_11, %c0_12] : memref<1x128xf32, #tpu.memory_space<vmem>>, vector<1x128xf32>
    %28 = vector.broadcast %27 : vector<1x128xf32> to vector<64x128xf32>
    %29 = arith.mulf %26, %28 : vector<64x128xf32>
    %c0_13 = arith.constant 0 : index
    %c0_14 = arith.constant 0 : index
    %30 = vector.load %arg5[%c0_13, %c0_14] : memref<1x128xf32, #tpu.memory_space<vmem>>, vector<1x128xf32>
    %31 = vector.broadcast %30 : vector<1x128xf32> to vector<64x128xf32>
    %32 = arith.addf %29, %31 : vector<64x128xf32>
    %cst_15 = arith.constant 0.000000e+00 : f32
    %33 = vector.broadcast %cst_15 : f32 to vector<64x128xf32>
    %34 = arith.maximumf %32, %33 : vector<64x128xf32>
    %c0_16 = arith.constant 0 : index
    %c0_17 = arith.constant 0 : index
    %35 = vector.load %arg6[%c0_16, %c0_17] : memref<128x128xf32, #tpu.memory_space<vmem>>, vector<128x128xf32>
    %cst_18 = arith.constant dense<0.000000e+00> : vector<64x128xf32>
    %36 = tpu.matmul %34, %35, %cst_18 {dimension_numbers = #tpu.dot_dimension_numbers<[1], [0], [0], [1], [0, 0, 1, 1], [], []>} : vector<64x128xf32>, vector<128x128xf32>, vector<64x128xf32> -> vector<64x128xf32>
    %c0_19 = arith.constant 0 : index
    %c0_20 = arith.constant 0 : index
    %37 = vector.load %arg7[%c0_19, %c0_20] : memref<1x128xf32, #tpu.memory_space<vmem>>, vector<1x128xf32>
    %38 = vector.broadcast %37 : vector<1x128xf32> to vector<64x128xf32>
    %39 = arith.addf %36, %38 : vector<64x128xf32>
    %c0_21 = arith.constant 0 : index
    %c0_22 = arith.constant 0 : index
    %40 = vector.load %arg8[%c0_21, %c0_22] : memref<64x128xf32, #tpu.memory_space<vmem>>, vector<64x128xf32>
    tpu.vector_store %arg8[%c0_21, %c0_22], %39 {strides = array<i32>} : memref<64x128xf32, #tpu.memory_space<vmem>>, vector<64x128xf32>,
    return
  }
  func.func @transform_0(%arg0: i32) -> (i32, i32) {
    %c0_i32 = arith.constant 0 : i32
    %c0_i32_0 = arith.constant 0 : i32
    return %arg0, %c0_i32 : i32, i32
  }
  func.func @transform_1(%arg0: i32) -> (i32, i32) {
    %c0_i32 = arith.constant 0 : i32
    %c0_i32_0 = arith.constant 0 : i32
    %c0_i32_1 = arith.constant 0 : i32
    return %c0_i32, %c0_i32_0 : i32, i32
  }
  func.func @transform_2(%arg0: i32) -> (i32, i32) {
    %c0_i32 = arith.constant 0 : i32
    %c0_i32_0 = arith.constant 0 : i32
    %c0_i32_1 = arith.constant 0 : i32
    return %c0_i32, %c0_i32_0 : i32, i32
  }
  func.func @transform_3(%arg0: i32) -> (i32, i32) {
    %c0_i32 = arith.constant 0 : i32
    %c0_i32_0 = arith.constant 0 : i32
    %c0_i32_1 = arith.constant 0 : i32
    return %c0_i32, %c0_i32_0 : i32, i32
  }
  func.func @transform_4(%arg0: i32) -> (i32, i32) {
    %c0_i32 = arith.constant 0 : i32
    %c0_i32_0 = arith.constant 0 : i32
    %c0_i32_1 = arith.constant 0 : i32
    return %c0_i32, %c0_i32_0 : i32, i32
  }
  func.func @transform_5(%arg0: i32) -> (i32, i32) {
    %c0_i32 = arith.constant 0 : i32
    %c0_i32_0 = arith.constant 0 : i32
    %c0_i32_1 = arith.constant 0 : i32
    return %c0_i32, %c0_i32_0 : i32, i32
  }
  func.func @transform_6(%arg0: i32) -> (i32, i32) {
    %c0_i32 = arith.constant 0 : i32
    %c0_i32_0 = arith.constant 0 : i32
    %c0_i32_1 = arith.constant 0 : i32
    return %c0_i32, %c0_i32_0 : i32, i32
  }
  func.func @transform_7(%arg0: i32) -> (i32, i32) {
    %c0_i32 = arith.constant 0 : i32
    %c0_i32_0 = arith.constant 0 : i32
    return %arg0, %c0_i32 : i32, i32
  }
}

</mosaic_0001>

<bundles_post_ra>
// kernel: tpu_custom_call.1
= control target key start
LH: loop header
LB: loop body
LE: loop exit
PB: predicated region body
PF: predicated region fallthrough
CT: control target
= control target key end

     0   :  { %12 = vsyncpa [#allocation3], 0  ;;  %s1594_s0 = inlined_call_operand.hbm [shape: f32[64,640], index: 0, kind: input, shape index: {}]   ;;  %s1595_s1 = inlined_call_operand.hbm [shape: bf16[640,128], index: 1, kind: input, shape index: {}]   ;;  %s1596_s2 = inlined_call_operand.vmem [shape: f32[1,128], index: 2, kind: input, shape index: {}]   ;;  %s1597_s3 = inlined_call_operand.vmem [shape: f32[1,128], index: 3, kind: input, shape index: {}]   ;;  %s1598_s4 = inlined_call_operand.vmem [shape: f32[1,128], index: 4, kind: input, shape index: {}]   ;;  %s1599_s5 = inlined_call_operand.hbm [shape: f32[128,128], index: 5, kind: input, shape index: {}]   ;;  %s1600_s6 = inlined_call_operand.vmem [shape: f32[1,128], index: 6, kind: input, shape index: {}]   ;;  %s1601_s7 = inlined_call_operand.hbm [shape: f32[64,128], index: 7, kind: output, shape index: {}]  }
   0x1   :  { %13 = vsyncpa [#allocation6], 0 }
   0x2   :  { %14 = vsyncpa [#allocation4], 0  ;;  %s1375_s24 = smov [#allocation5]   ;;  %s1281_s28 = scalar_lea.hbm %s1595_s1, 5120 }
   0x3   :  { %s32_s25 = sshll.u32 %s1375_s24, 4  ;;  %p1282_p0 = scmp.ne.s32.totalorder %s1595_s1, %s1281_s28  ;;  %s33_s25 = int_to_ptr.vmem [resolvable:$true] %s32_s25 }
   0x4   :  { %p1285_p1 = scmp.lt.u32.totalorder %s1281_s28, %s1595_s1 }
   0x6   :  { %p1287_p2 = pnand %p1285_p1, %p1282_p0 }
   0x8   :  { %1290 = shalt.err (!%p1287_p2)
}
   0x9   :  { %s1291_s10 = scalar_lea.vmem %s33_s25, 5120  ;;  %p1296_p4 = scmp.lt.s32.totalorder %s33_s25, %s33_s25 }
   0xa   :  { %p1292_p3 = scmp.ne.s32.totalorder %s33_s25, %s1291_s10  ;;  %p1297_p5 = scmp.lt.s32.totalorder %s1291_s10, %s1291_s10 }
   0xc   :  { %p1298_p6 = por %p1297_p5, %p1296_p4 }
   0xe   :  { %p1299_p7 = pnand %p1298_p6, %p1292_p3 }
  0x10   :  { %1302 = shalt.err (!%p1299_p7)
}
  0x11   :  { %s1376_s11 = smov 64   ;;  %s1377_s12 = smov 4  }
  0x12   :  { %38 = dma.hbm_to_vmem [thread:$0]  %s1595_s1, 5120, %s33_s25, [#allocation6], %s1376_s11, %s1376_s11, %s1377_s12  }
  0x13   :  { %s1378_s15 = smov [#allocation2]   ;;  %s1303_s19 = scalar_lea.hbm %s1594_s0, 5120 }
  0x14   :  { %s20_s16 = sshll.u32 %s1378_s15, 4  ;;  %p1304_p8 = scmp.ne.s32.totalorder %s1594_s0, %s1303_s19  ;;  %s21_s16 = int_to_ptr.vmem [resolvable:$true] %s20_s16 }
  0x15   :  { %p1307_p9 = scmp.lt.u32.totalorder %s1303_s19, %s1594_s0 }
  0x17   :  { %p1309_p10 = pnand %p1307_p9, %p1304_p8 }
  0x19   :  { %1312 = shalt.err (!%p1309_p10)
}
  0x1a   :  { %s1313_s24 = scalar_lea.vmem %s21_s16, 5120  ;;  %p1318_p12 = scmp.lt.s32.totalorder %s21_s16, %s21_s16 }
  0x1b   :  { %p1314_p11 = scmp.ne.s32.totalorder %s21_s16, %s1313_s24  ;;  %p1319_p13 = scmp.lt.s32.totalorder %s1313_s24, %s1313_s24 }
  0x1d   :  { %p1320_p0 = por %p1319_p13, %p1318_p12 }
  0x1f   :  { %p1321_p1 = pnand %p1320_p0, %p1314_p11 }
  0x21   :  { %1324 = shalt.err (!%p1321_p1)
}
  0x22   :  { %s1379_s1 = smov 640   ;;  %s1380_s25 = smov 40  }
  0x23   :  { %26 = dma.hbm_to_vmem [thread:$0]  %s1594_s0, 5120, %s21_s16, [#allocation3], %s1379_s1, %s1379_s1, %s1380_s25  }
  0x24   :  { %s1381_s28 = smov [#allocation7]   ;;  %s1325_s9 = scalar_lea.hbm %s1599_s5, 2048 }
  0x25   :  { %s50_s29 = sshll.u32 %s1381_s28, 4  ;;  %p1326_p2 = scmp.ne.s32.totalorder %s1599_s5, %s1325_s9  ;;  %s51_s29 = int_to_ptr.vmem [resolvable:$true] %s50_s29 }
  0x26   :  { %p1329_p3 = scmp.lt.u32.totalorder %s1325_s9, %s1599_s5 }
  0x28   :  { %p1331_p4 = pnand %p1329_p3, %p1326_p2 }
  0x2a   :  { %1334 = shalt.err (!%p1331_p4)
}
  0x2b   :  { %s1335_s14 = scalar_lea.vmem %s51_s29, 2048  ;;  %p1340_p6 = scmp.lt.s32.totalorder %s51_s29, %s51_s29 }
  0x2c   :  { %p1336_p5 = scmp.ne.s32.totalorder %s51_s29, %s1335_s14  ;;  %p1341_p7 = scmp.lt.s32.totalorder %s1335_s14, %s1335_s14 }
  0x2e   :  { %p1342_p8 = por %p1341_p7, %p1340_p6 }
  0x30   :  { %p1343_p9 = pnand %p1342_p8, %p1336_p5 }
  0x32   :  { %1346 = shalt.err (!%p1343_p9)
}
  0x33   :  { %s1382_s0 = smov 128   ;;  %s1383_s15 = smov 8  }
  0x34   :  { %56 = dma.hbm_to_vmem [thread:$0]  %s1599_s5, 2048, %s51_s29, [#allocation6], %s1382_s0, %s1382_s0, %s1383_s15  }
  0x35   :  { %1369 = dma.done.wait [#allocation3], 5120  }
  0x36   :  { %1370 = vsyncadd [#allocation3], 4294962176 }
  0x37   :  { %1371 = dma.done.wait [#allocation6], 7168  }
  0x38   :  { %1372 = vsyncadd [#allocation6], 4294960128  ;;  %v1225_v0 = vld [vmem:[#allocation5 + $0x40] sm:$0xff]   ;;  %v1229_v4 = vld [vmem:[#allocation5 + $0x48] sm:$0xff]   ;;  %s1384_s22 = smov [#allocation8]  }
  0x39   :  { %v1226_v1 = vld [vmem:[#allocation5] sm:$0xff]   ;;  %999 = vmatprep.subr.bf16.mxu0 %v1225_v0  ;;  %v1230_v5 = vld [vmem:[#allocation5 + $0x8] sm:$0xff]   ;;  %v1233_v8 = vld [vmem:[#allocation5 + $0x50] sm:$0xff]   ;;  %s942_s23 = sshll.u32 %s1384_s22, 4  ;;  %s943_s23 = int_to_ptr.vmem [resolvable:$true] %s942_s23 }
  0x3a   :  { %v1227_v2 = vld [vmem:[#allocation5 + $0xc0] sm:$0xff]   ;;  %1000 = vmatpush3.bf16.msra.mxu0 %v1226_v1  ;;  %v1231_v6 = vld [vmem:[#allocation5 + $0xc8] sm:$0xff]   ;;  %v1234_v9 = vld [vmem:[#allocation5 + $0x10] sm:$0xff]   ;;  %p1352_p11 = scmp.lt.s32.totalorder %s943_s23, %s943_s23 }
  0x3b   :  { %v1228_v3 = vld [vmem:[#allocation5 + $0x80] sm:$0xff]   ;;  %1039 = vmatprep.subr.bf16.mxu1 %v1227_v2  ;;  %1001 = vmatprep.subr.bf16.mxu0 %v1229_v4  ;;  %v1232_v7 = vld [vmem:[#allocation5 + $0x88] sm:$0xff]   ;;  %v1235_v10 = vld [vmem:[#allocation5 + $0xd0] sm:$0xff]  }
  0x3c   :  { %1040 = vmatpush3.bf16.msra.mxu1 %v1228_v3  ;;  %v1236_v11 = vld [vmem:[#allocation5 + $0x90] sm:$0xff]   ;;  %v1237_v12 = vld [vmem:[#allocation5 + $0x58] sm:$0xff]   ;;  %v1241_v16 = vld [vmem:[#allocation5 + $0x60] sm:$0xff]  }
  0x3d   :  { %1041 = vmatprep.subr.bf16.mxu1 %v1231_v6  ;;  %v1238_v13 = vld [vmem:[#allocation5 + $0x18] sm:$0xff]   ;;  %v1242_v17 = vld [vmem:[#allocation5 + $0x20] sm:$0xff]   ;;  %v1245_v20 = vld [vmem:[#allocation5 + $0x68] sm:$0xff]  }
  0x3e   :  { %1002 = vmatpush3.bf16.msra.mxu0 %v1230_v5  ;;  %v1239_v14 = vld [vmem:[#allocation5 + $0xd8] sm:$0xff]   ;;  %v1243_v18 = vld [vmem:[#allocation5 + $0xe0] sm:$0xff]   ;;  %v1246_v21 = vld [vmem:[#allocation5 + $0x28] sm:$0xff]  }
  0x3f   :  { %1003 = vmatprep.subr.bf16.mxu0 %v1233_v8  ;;  %v1240_v15 = vld [vmem:[#allocation5 + $0x98] sm:$0xff]   ;;  %v1244_v19 = vld [vmem:[#allocation5 + $0xa0] sm:$0xff]   ;;  %v1247_v22 = vld [vmem:[#allocation5 + $0xe8] sm:$0xff]  }
  0x40   :  { %1042 = vmatpush3.bf16.msra.mxu1 %v1232_v7  ;;  %v1248_v23 = vld [vmem:[#allocation5 + $0xa8] sm:$0xff]   ;;  %v1249_v24 = vld [vmem:[#allocation5 + $0x70] sm:$0xff]   ;;  %v1253_v28 = vld [vmem:[#allocation5 + $0x78] sm:$0xff]  }
  0x41   :  { %1043 = vmatprep.subr.bf16.mxu1 %v1235_v10  ;;  %v1250_v25 = vld [vmem:[#allocation5 + $0x30] sm:$0xff]   ;;  %v1254_v29 = vld [vmem:[#allocation5 + $0x38] sm:$0xff]   ;;  %v70_v31 = vld [vmem:[#allocation2 + $0x8] sm:$0xff] }
  0x42   :  { %1004 = vmatpush3.bf16.msra.mxu0 %v1234_v9  ;;  %v1251_v26 = vld [vmem:[#allocation5 + $0xf0] sm:$0xff]   ;;  %v1255_v30 = vld [vmem:[#allocation5 + $0xf8] sm:$0xff]   ;;  %v69_v35 = vld [vmem:[#allocation2] sm:$0xff] }
  0x43   :  { %1005 = vmatprep.subr.bf16.mxu0 %v1237_v12  ;;  %v1252_v27 = vld [vmem:[#allocation5 + $0xb0] sm:$0xff]   ;;  %v1256_v34 = vld [vmem:[#allocation5 + $0xb8] sm:$0xff]   ;;  %v74_v36 = vld [vmem:[#allocation2 + $0x28] sm:$0xff] }
  0x44   :  { %1044 = vmatpush3.bf16.msra.mxu1 %v1236_v11  ;;  %v75_v32 = vld [vmem:[#allocation2 + $0x30] sm:$0xff]  ;;  %v109_v37 = vpack.c.bf16 %v74_v36, %v69_v35  ;;  %v1257_v38 = vld [vmem:[#allocation5 + $0x100] sm:$0xff]   ;;  %v72_v39 = vld [vmem:[#allocation2 + $0x18] sm:$0xff] }
  0x45   :  { %1045 = vmatprep.subr.bf16.mxu1 %v1239_v14  ;;  %v110_v33 = vpack.c.bf16 %v75_v32, %v70_v31  ;;  %v77_v40 = vld [vmem:[#allocation2 + $0x40] sm:$0xff]  ;;  %v71_v42 = vld [vmem:[#allocation2 + $0x10] sm:$0xff]  ;;  %v76_v43 = vld [vmem:[#allocation2 + $0x38] sm:$0xff] }
  0x46   :  { %1006 = vmatpush3.bf16.msra.mxu0 %v1238_v13  ;;  %v112_v41 = vpack.c.bf16 %v77_v40, %v72_v39  ;;  %v111_v44 = vpack.c.bf16 %v76_v43, %v71_v42  ;;  %v1258_v45 = vld [vmem:[#allocation5 + $0x108] sm:$0xff]   ;;  %v80_v46 = vld [vmem:[#allocation2 + $0x58] sm:$0xff]  ;;  %v85_v47 = vld [vmem:[#allocation2 + $0x80] sm:$0xff] }
  0x47   :  { %1007 = vmatprep.subr.bf16.mxu0 %v1241_v16  ;;  %488 = vmatprep.mubr.bf16.mxu0 %v110_v33  ;;  %v79_v48 = vld [vmem:[#allocation2 + $0x50] sm:$0xff]  ;;  %v84_v49 = vld [vmem:[#allocation2 + $0x78] sm:$0xff]  ;;  %v115_v50 = vpack.c.bf16 %v85_v47, %v80_v46  ;;  %v82_v52 = vld [vmem:[#allocation2 + $0x68] sm:$0xff] }
  0x48   :  { %1046 = vmatpush3.bf16.msra.mxu1 %v1240_v15  ;;  %553 = vmatprep.mubr.bf16.mxu1 %v112_v41  ;;  %v1259_v51 = vld [vmem:[#allocation5 + $0x110] sm:$0xff]   ;;  %v81_v54 = vld [vmem:[#allocation2 + $0x60] sm:$0xff]  ;;  %v114_v55 = vpack.c.bf16 %v84_v49, %v79_v48  ;;  %v86_v57 = vld [vmem:[#allocation2 + $0x88] sm:$0xff] }
  0x49   :  { %1047 = vmatprep.subr.bf16.mxu1 %v1243_v18  ;;  %v87_v53 = vld [vmem:[#allocation2 + $0x90] sm:$0xff]  ;;  %v90_v58 = vld [vmem:[#allocation2 + $0xa8] sm:$0xff]  ;;  %v116_v60 = vpack.c.bf16 %v86_v57, %v81_v54  ;;  %v1260_v61 = vld [vmem:[#allocation5 + $0x118] sm:$0xff]  }
  0x4a   :  { %1008 = vmatpush3.bf16.msra.mxu0 %v1242_v17  ;;  %v117_v56 = vpack.c.bf16 %v87_v53, %v82_v52  ;;  %v95_v59 = vld [vmem:[#allocation2 + $0xd0] sm:$0xff]  ;;  %v92_v63 = vld [vmem:[#allocation2 + $0xb8] sm:$0xff]  ;;  %v89_v0 = vld [vmem:[#allocation2 + $0xa0] sm:$0xff] }
  0x4b   :  { %1009 = vmatprep.subr.bf16.mxu0 %v1245_v20  ;;  %v120_v62 = vpack.c.bf16 %v95_v59, %v90_v58  ;;  %v94_v1 = vld [vmem:[#allocation2 + $0xc8] sm:$0xff]  ;;  %v97_v2 = vld [vmem:[#allocation2 + $0xe0] sm:$0xff]  ;;  %v91_v5 = vld [vmem:[#allocation2 + $0xb0] sm:$0xff] }
  0x4c   :  { %1048 = vmatpush3.bf16.msra.mxu1 %v1244_v19  ;;  %v1261_v3 = vld [vmem:[#allocation5 + $0x120] sm:$0xff]   ;;  %v122_v4 = vpack.c.bf16 %v97_v2, %v92_v63  ;;  %v100_v6 = vld [vmem:[#allocation2 + $0xf8] sm:$0xff]  ;;  %v119_v9 = vpack.c.bf16 %v94_v1, %v89_v0  ;;  %v102_v10 = vld [vmem:[#allocation2 + $0x108] sm:$0xff] }
  0x4d   :  { %1049 = vmatprep.subr.bf16.mxu1 %v1247_v22  ;;  %v105_v7 = vld [vmem:[#allocation2 + $0x120] sm:$0xff]  ;;  %v96_v8 = vld [vmem:[#allocation2 + $0xd8] sm:$0xff]  ;;  %v107_v11 = vld [vmem:[#allocation2 + $0x130] sm:$0xff] }
  0x4e   :  { %1010 = vmatpush3.bf16.msra.mxu0 %v1246_v21  ;;  %v125_v12 = vpack.c.bf16 %v105_v7, %v100_v6  ;;  %v121_v13 = vpack.c.bf16 %v96_v8, %v91_v5  ;;  %v1262_v14 = vld [vmem:[#allocation5 + $0x128] sm:$0xff]   ;;  %v127_v15 = vpack.c.bf16 %v107_v11, %v102_v10  ;;  %v99_v16 = vld [vmem:[#allocation2 + $0xf0] sm:$0xff]  ;;  %v104_v17 = vld [vmem:[#allocation2 + $0x118] sm:$0xff] }
  0x4f   :  { %1011 = vmatprep.subr.bf16.mxu0 %v1249_v24  ;;  %v1263_v18 = vld [vmem:[#allocation5 + $0x130] sm:$0xff]   ;;  %v73_v19 = vld [vmem:[#allocation2 + $0x20] sm:$0xff]  ;;  %v78_v20 = vld [vmem:[#allocation2 + $0x48] sm:$0xff] }
  0x50   :  { %1050 = vmatpush3.bf16.msra.mxu1 %v1248_v23  ;;  %v101_v21 = vld [vmem:[#allocation2 + $0x100] sm:$0xff]  ;;  %v106_v22 = vld [vmem:[#allocation2 + $0x128] sm:$0xff]  ;;  %v124_v23 = vpack.c.bf16 %v104_v17, %v99_v16  ;;  %v113_v24 = vpack.c.bf16 %v78_v20, %v73_v19  ;;  %v103_v33 = vld [vmem:[#allocation2 + $0x110] sm:$0xff] }
  0x51   :  { %1051 = vmatprep.subr.bf16.mxu1 %v1251_v26  ;;  %v1264_v26 = vld [vmem:[#allocation5 + $0x138] sm:$0xff]  }
  0x52   :  { %1012 = vmatpush3.bf16.msra.mxu0 %v1250_v25  ;;  %v126_v25 = vpack.c.bf16 %v106_v22, %v101_v21 }
  0x53   :  { %1013 = vmatprep.subr.bf16.mxu0 %v1253_v28  ;;  %v88_v28 = vld [vmem:[#allocation2 + $0x98] sm:$0xff] }
  0x54   :  { %1052 = vmatpush3.bf16.msra.mxu1 %v1252_v27  ;;  %v83_v27 = vld [vmem:[#allocation2 + $0x70] sm:$0xff] }
  0x55   :  { %1053 = vmatprep.subr.bf16.mxu1 %v1255_v30  ;;  %v98_v30 = vld [vmem:[#allocation2 + $0xe8] sm:$0xff]  ;;  %v118_v31 = vpack.c.bf16 %v88_v28, %v83_v27 }
  0x56   :  { %1014 = vmatpush3.bf16.msra.mxu0 %v1254_v29  ;;  %v93_v29 = vld [vmem:[#allocation2 + $0xc0] sm:$0xff] }
  0x57   :  { %1115 = vmatprep.subr.bf16.mxu0 %v1257_v38  ;;  %v123_v32 = vpack.c.bf16 %v98_v30, %v93_v29 }
  0x58   :  { %1054 = vmatpush3.bf16.msra.mxu1 %v1256_v34  ;;  %v108_v34 = vld [vmem:[#allocation2 + $0x138] sm:$0xff] }
  0x59   :  { %489 = vmatmul.mubr.bf16.vlgmr.msra.gmra.mrb[0].mxu0 %v109_v37  ;;  %v128_v35 = vpack.c.bf16 %v108_v34, %v103_v33  ;;  %v955_v37 = vld [vmem:[%s1596_s2] ss:$0 sm:$0xff] }
  0x5a   :  { %1116 = vmatpush3.bf16.msra.mxu0 %v1257_v38  ;;  %496 = vmatprep.mubr.bf16.mxu0 %v115_v50 }
  0x5b   :  { %554 = vmatmul.mubr.bf16.vlgmr.msra.gmra.mrb[0].mxu1 %v111_v44  ;;  %1117 = vmatprep.subr.bf16.mxu0 %v1258_v45 }
  0x5c   :  { %561 = vmatprep.mubr.bf16.mxu1 %v117_v56 }
  0x5e   :  { %1118 = vmatpush3.bf16.msra.mxu0 %v1258_v45 }
  0x5f   :  { %1119 = vmatprep.subr.bf16.mxu0 %v1259_v51 }
  0x61   :  { %497 = vmatmul.mubr.bf16.gmra.mrb[4].mxu0 %v114_v55 }
  0x62   :  { %1120 = vmatpush3.bf16.msra.mxu0 %v1259_v51  ;;  %504 = vmatprep.mubr.bf16.mxu0 %v120_v62 }
  0x63   :  { %562 = vmatmul.mubr.bf16.gmra.mrb[4].mxu1 %v116_v60  ;;  %1121 = vmatprep.subr.bf16.mxu0 %v1260_v61 }
  0x64   :  { %569 = vmatprep.mubr.bf16.mxu1 %v122_v4 }
  0x66   :  { %1122 = vmatpush3.bf16.msra.mxu0 %v1260_v61 }
  0x67   :  { %1123 = vmatprep.subr.bf16.mxu0 %v1261_v3 }
  0x69   :  { %505 = vmatmul.mubr.bf16.gmra.mrb[8].mxu0 %v119_v9 }
  0x6a   :  { %1124 = vmatpush3.bf16.msra.mxu0 %v1261_v3  ;;  %512 = vmatprep.mubr.bf16.mxu0 %v125_v12 }
  0x6b   :  { %570 = vmatmul.mubr.bf16.gmra.mrb[8].mxu1 %v121_v13  ;;  %1125 = vmatprep.subr.bf16.mxu0 %v1262_v14 }
  0x6c   :  { %577 = vmatprep.mubr.bf16.mxu1 %v127_v15 }
  0x6e   :  { %1126 = vmatpush3.bf16.msra.mxu0 %v1262_v14 }
  0x6f   :  { %1127 = vmatprep.subr.bf16.mxu0 %v1263_v18 }
  0x71   :  { %513 = vmatmul.mubr.bf16.gmra.mrb[12].mxu0 %v124_v23 }
  0x72   :  { %1128 = vmatpush3.bf16.msra.mxu0 %v1263_v18  ;;  %1131 = vmatprep.mubr.bf16.mxu0 %v113_v24 }
  0x73   :  { %578 = vmatmul.mubr.bf16.gmra.mrb[12].mxu1 %v126_v25  ;;  %1129 = vmatprep.subr.bf16.mxu0 %v1264_v26 }
  0x76   :  { %1130 = vmatpush3.bf16.msra.mxu0 %v1264_v26 }
  0x79   :  { %1132 = vmatmul.mubr.bf16.vlgmr.msra.gmra.mrb[16].mxu0 %v118_v31 }
  0x7a   :  { %1135 = vmatprep.mubr.bf16.mxu0 %v123_v32 }
  0x81   :  { %1136 = vmatmul.mubr.bf16.gmra.mrb[20].mxu0 %v128_v35 }
 0x12c   :  { %v1015_v36 = vpop.f32.mrb[0].mxu0 }
 0x12d   :  { %v1016_v38 = vpop.f32.mrb[1].mxu0 }
 0x12e   :  { %v1017_v39 = vadd.f32 %v1016_v38, %v1015_v36  ;;  %v1018_v40 = vpop.f32.mrb[2].mxu0  ;;  %v1055_v41 = vpop.f32.mrb[0].mxu1 }
 0x12f   :  { %v1019_v42 = vpop.f32.mrb[3].mxu0  ;;  %v1056_v43 = vpop.f32.mrb[1].mxu1 }
 0x130   :  { %v491_v44 = vadd.f32 %v1017_v39, %v955_v37  ;;  %v1020_v45 = vadd.f32 %v1019_v42, %v1018_v40  ;;  %v1057_v46 = vadd.f32 %v1056_v43, %v1055_v41  ;;  %v1058_v47 = vpop.f32.mrb[2].mxu1 }
 0x131   :  { %v1059_v48 = vpop.f32.mrb[3].mxu1 }
 0x132   :  { %v494_v49 = vadd.f32 %v1020_v45, %v955_v37  ;;  %v1060_v50 = vadd.f32 %v1059_v48, %v1058_v47  ;;  %v556_v51 = vadd.f32 %v1057_v46, %v491_v44 }
 0x134   :  { %v1021_v52 = vpop.f32.mrb[4].mxu0  ;;  %v559_v53 = vadd.f32 %v1060_v50, %v494_v49 }
 0x135   :  { %v1022_v54 = vpop.f32.mrb[5].mxu0 }
 0x136   :  { %v1023_v55 = vadd.f32 %v1022_v54, %v1021_v52  ;;  %v1024_v56 = vpop.f32.mrb[6].mxu0  ;;  %v1061_v57 = vpop.f32.mrb[4].mxu1 }
 0x137   :  { %v1025_v58 = vpop.f32.mrb[7].mxu0  ;;  %v1062_v59 = vpop.f32.mrb[5].mxu1 }
 0x138   :  { %v499_v60 = vadd.f32 %v1023_v55, %v955_v37  ;;  %v1026_v61 = vadd.f32 %v1025_v58, %v1024_v56  ;;  %v1063_v62 = vadd.f32 %v1062_v59, %v1061_v57  ;;  %v1064_v63 = vpop.f32.mrb[6].mxu1  ;;  %v801_v57 = vld [vmem:[#allocation7] sm:$0xff]  ;;  %v802_v58 = vld [vmem:[#allocation7 + $0x8] sm:$0xff] }
 0x139   :  { %v1065_v0 = vpop.f32.mrb[7].mxu1  ;;  %v1183_v59 = vpack.c.bf16 %v802_v58, %v801_v57 }
 0x13a   :  { %v502_v1 = vadd.f32 %v1026_v61, %v955_v37  ;;  %v1066_v2 = vadd.f32 %v1065_v0, %v1064_v63  ;;  %v564_v3 = vadd.f32 %v1063_v62, %v499_v60  ;;  %v803_v62 = vld [vmem:[#allocation7 + $0x10] sm:$0xff]  ;;  %v804_v63 = vld [vmem:[#allocation7 + $0x18] sm:$0xff] }
 0x13b   :  { %1184 = vmatprep.subr.bf16.mxu1 %v1183_v59 }
 0x13c   :  { %v1027_v4 = vpop.f32.mrb[8].mxu0  ;;  %v567_v5 = vadd.f32 %v1066_v2, %v502_v1  ;;  %1186 = vmatpush3.bf16.msra.mxu1 %v1183_v59  ;;  %v1187_v1 = vpack.c.bf16 %v804_v63, %v803_v62 }
 0x13d   :  { %v1028_v6 = vpop.f32.mrb[9].mxu0 }
 0x13e   :  { %v1029_v7 = vadd.f32 %v1028_v6, %v1027_v4  ;;  %v1030_v8 = vpop.f32.mrb[10].mxu0  ;;  %v1067_v9 = vpop.f32.mrb[8].mxu1  ;;  %1188 = vmatprep.subr.bf16.mxu1 %v1187_v1  ;;  %v806_v4 = vld [vmem:[#allocation7 + $0x28] sm:$0xff]  ;;  %v807_v6 = vld [vmem:[#allocation7 + $0x30] sm:$0xff] }
 0x13f   :  { %v1031_v10 = vpop.f32.mrb[11].mxu0  ;;  %v1068_v11 = vpop.f32.mrb[9].mxu1 }
 0x140   :  { %v507_v12 = vadd.f32 %v1029_v7, %v955_v37  ;;  %v1032_v13 = vadd.f32 %v1031_v10, %v1030_v8  ;;  %v1069_v14 = vadd.f32 %v1068_v11, %v1067_v9  ;;  %v1070_v15 = vpop.f32.mrb[10].mxu1  ;;  %1190 = vmatpush3.bf16.msra.mxu1 %v1187_v1  ;;  %v808_v7 = vld [vmem:[#allocation7 + $0x38] sm:$0xff]  ;;  %v809_v9 = vld [vmem:[#allocation7 + $0x40] sm:$0xff]  ;;  %v810_v10 = vld [vmem:[#allocation7 + $0x48] sm:$0xff] }
 0x141   :  { %v1071_v16 = vpop.f32.mrb[11].mxu1  ;;  %v1195_v8 = vpack.c.bf16 %v808_v7, %v807_v6  ;;  %v1199_v11 = vpack.c.bf16 %v810_v10, %v809_v9  ;;  %v1531_v9 = vld [vmem:[%s1597_s3] ss:$0 sm:$0xff] }
 0x142   :  { %v510_v17 = vadd.f32 %v1032_v13, %v955_v37  ;;  %v1072_v18 = vadd.f32 %v1071_v16, %v1070_v15  ;;  %v572_v19 = vadd.f32 %v1069_v14, %v507_v12  ;;  %v811_v12 = vld [vmem:[#allocation7 + $0x50] sm:$0xff]  ;;  %v812_v13 = vld [vmem:[#allocation7 + $0x58] sm:$0xff]  ;;  %v813_v15 = vld [vmem:[#allocation7 + $0x60] sm:$0xff] }
 0x143   :  { %v1203_v14 = vpack.c.bf16 %v812_v13, %v811_v12  ;;  %v814_v16 = vld [vmem:[#allocation7 + $0x68] sm:$0xff] }
 0x144   :  { %v1033_v20 = vpop.f32.mrb[12].mxu0  ;;  %v575_v21 = vadd.f32 %v1072_v18, %v510_v17  ;;  %v1207_v17 = vpack.c.bf16 %v814_v16, %v813_v15  ;;  %v815_v18 = vld [vmem:[#allocation7 + $0x70] sm:$0xff]  ;;  %v1540_v16 = vld [vmem:[%s1598_s4] ss:$0 sm:$0xff] }
 0x145   :  { %v1034_v22 = vpop.f32.mrb[13].mxu0 }
 0x146   :  { %v1035_v23 = vadd.f32 %v1034_v22, %v1033_v20  ;;  %v1036_v24 = vpop.f32.mrb[14].mxu0  ;;  %v1073_v25 = vpop.f32.mrb[12].mxu1 }
 0x147   :  { %v1037_v26 = vpop.f32.mrb[15].mxu0  ;;  %v1074_v27 = vpop.f32.mrb[13].mxu1 }
 0x148   :  { %v515_v28 = vadd.f32 %v1035_v23, %v955_v37  ;;  %v1038_v29 = vadd.f32 %v1037_v26, %v1036_v24  ;;  %v1075_v30 = vadd.f32 %v1074_v27, %v1073_v25  ;;  %v1076_v31 = vpop.f32.mrb[14].mxu1 }
 0x149   :  { %v1077_v32 = vpop.f32.mrb[15].mxu1 }
 0x14a   :  { %v518_v33 = vadd.f32 %v1038_v29, %v955_v37  ;;  %v1078_v34 = vadd.f32 %v1077_v32, %v1076_v31  ;;  %v580_v35 = vadd.f32 %v1075_v30, %v515_v28 }
 0x14c   :  { %v1133_v36 = vpop.f32.mrb[16].mxu0  ;;  %v583_v38 = vadd.f32 %v1078_v34, %v518_v33 }
 0x14d   :  { %v1467_v39 = vadd.f32 %v1133_v36, %v564_v3  ;;  %v620_v40 = vpop.f32.mrb[17].mxu0  ;;  %v805_v3 = vld [vmem:[#allocation7 + $0x20] sm:$0xff] }
 0x14e   :  { %v1469_v41 = vadd.f32 %v620_v40, %v556_v51  ;;  %v1134_v42 = vpop.f32.mrb[18].mxu0 }
 0x14f   :  { %v1471_v43 = vadd.f32 %v1134_v42, %v567_v5  ;;  %v623_v44 = vpop.f32.mrb[19].mxu0  ;;  %655 = vadd.xlane.f32.xlu0 %v1467_v39  ;;  %v677_v49 = vmul.f32 %v1467_v39, %v1467_v39  ;;  %v1191_v5 = vpack.c.bf16 %v806_v4, %v805_v3 }
 0x150   :  { %v1474_v45 = vadd.f32 %v623_v44, %v559_v53  ;;  %v675_v37 = vmul.f32 %v1469_v41, %v1469_v41 }
 0x151   :  { %657 = vadd.xlane.f32.xlu1 %v1471_v43  ;;  %v678_v54 = vmul.f32 %v1471_v43, %v1471_v43  ;;  %1192 = vmatprep.subr.bf16.mxu1 %v1191_v5 }
 0x152   :  { %v676_v56 = vmul.f32 %v1474_v45, %v1474_v45  ;;  %1194 = vmatpush3.bf16.msra.mxu1 %v1191_v5 }
 0x153   :  { %651 = vadd.xlane.f32.xlu0 %v1469_v41  ;;  %1196 = vmatprep.subr.bf16.mxu1 %v1195_v8 }
 0x154   :  { %v1137_v46 = vpop.f32.mrb[20].mxu0 }
 0x155   :  { %v1480_v47 = vadd.f32 %v1137_v46, %v580_v35  ;;  %v636_v48 = vpop.f32.mrb[21].mxu0  ;;  %683 = vadd.xlane.f32.xlu1 %v675_v37 }
 0x156   :  { %v1484_v50 = vadd.f32 %v636_v48, %v572_v19  ;;  %v1138_v51 = vpop.f32.mrb[22].mxu0  ;;  %1198 = vmatpush3.bf16.msra.mxu1 %v1195_v8  ;;  %v816_v19 = vld [vmem:[#allocation7 + $0x78] sm:$0xff] }
 0x157   :  { %v1486_v52 = vadd.f32 %v1138_v51, %v583_v38  ;;  %v639_v53 = vpop.f32.mrb[23].mxu0  ;;  %687 = vadd.xlane.f32.xlu0 %v677_v49  ;;  %v681_v0 = vmul.f32 %v1480_v47, %v1480_v47  ;;  %1200 = vmatprep.subr.bf16.mxu1 %v1199_v11  ;;  %v1211_v20 = vpack.c.bf16 %v816_v19, %v815_v18 }
 0x158   :  { %v1490_v55 = vadd.f32 %v639_v53, %v575_v21  ;;  %v679_v60 = vmul.f32 %v1484_v50, %v1484_v50 }
 0x159   :  { %689 = vadd.xlane.f32.xlu1 %v678_v54  ;;  %v682_v2 = vmul.f32 %v1486_v52, %v1486_v52 }
 0x15a   :  { %v680_v61 = vmul.f32 %v1490_v55, %v1490_v55  ;;  %1202 = vmatpush3.bf16.msra.mxu1 %v1199_v11 }
 0x15b   :  { %653 = vadd.xlane.f32.xlu0 %v1474_v45  ;;  %1204 = vmatprep.subr.bf16.mxu1 %v1203_v14 }
 0x15d   :  { %685 = vadd.xlane.f32.xlu1 %v676_v56 }
 0x15e   :  { %1206 = vmatpush3.bf16.msra.mxu1 %v1203_v14 }
 0x15f   :  { %663 = vadd.xlane.f32.xlu0 %v1480_v47  ;;  %1208 = vmatprep.subr.bf16.mxu1 %v1207_v17 }
 0x161   :  { %665 = vadd.xlane.f32.xlu1 %v1486_v52 }
 0x162   :  { %1210 = vmatpush3.bf16.msra.mxu1 %v1207_v17 }
 0x163   :  { %659 = vadd.xlane.f32.xlu0 %v1484_v50  ;;  %1212 = vmatprep.subr.bf16.mxu1 %v1211_v20 }
 0x165   :  { %661 = vadd.xlane.f32.xlu1 %v1490_v55 }
 0x166   :  { %1214 = vmatpush3.bf16.msra.mxu1 %v1211_v20 }
 0x167   :  { %691 = vadd.xlane.f32.xlu0 %v679_v60 }
 0x169   :  { %693 = vadd.xlane.f32.xlu1 %v680_v61 }
 0x16b   :  { %695 = vadd.xlane.f32.xlu0 %v681_v0 }
 0x16d   :  { %697 = vadd.xlane.f32.xlu1 %v682_v2 }
 0x1dc   :  { %v656_v21 = vpop.xlane.xlu0 %655 }
 0x1dd   :  { %v1507_v24 = vmul.f32 0.015625, %v656_v21 }
 0x1de   :  { %v658_v22 = vpop.xlane.xlu1 %657 }
 0x1df   :  { %v1509_v27 = vmul.f32 0.015625, %v658_v22  ;;  %v709_v31 = vmul.f32 %v1507_v24, %v1507_v24  ;;  %v733_v17 = vsub.f32 %v1467_v39, %v1507_v24 }
 0x1e0   :  { %v652_v23 = vpop.xlane.xlu0 %651 }
 0x1e1   :  { %v667_v25 = vmul.f32 0.015625, %v652_v23  ;;  %v710_v35 = vmul.f32 %v1509_v27, %v1509_v27 }
 0x1e2   :  { %v684_v26 = vpop.xlane.xlu1 %683 }
 0x1e3   :  { %v707_v28 = vmul.f32 %v667_v25, %v667_v25  ;;  %v699_v29 = vmul.f32 0.015625, %v684_v26  ;;  %v731_v3 = vsub.f32 %v1469_v41, %v667_v25  ;;  %v734_v26 = vsub.f32 %v1471_v43, %v1509_v27 }
 0x1e4   :  { %v688_v30 = vpop.xlane.xlu0 %687 }
 0x1e5   :  { %v715_v32 = vsub.f32 %v699_v29, %v707_v28  ;;  %v701_v33 = vmul.f32 0.015625, %v688_v30 }
 0x1e6   :  { %v690_v34 = vpop.xlane.xlu1 %689 }
 0x1e7   :  { %v723_v36 = vmax.f32 %v715_v32, 0.0  ;;  %v717_v38 = vsub.f32 %v701_v33, %v709_v31  ;;  %v702_v40 = vmul.f32 0.015625, %v690_v34 }
 0x1e8   :  { %v654_v42 = vpop.xlane.xlu0 %653 }
 0x1e9   :  { %v739_v44 = vadd.f32 1e-05, %v723_v36  ;;  %v725_v37 = vmax.f32 %v717_v38, 0.0  ;;  %v718_v46 = vsub.f32 %v702_v40, %v710_v35  ;;  %v1515_v48 = vmul.f32 0.015625, %v654_v42 }
 0x1ea   :  { %v686_v49 = vpop.xlane.xlu1 %685 }
 0x1eb   :  { %1265 = vrsqrt.f32 %v739_v44  ;;  %v741_v51 = vadd.f32 1e-05, %v725_v37  ;;  %v726_v53 = vmax.f32 %v718_v46, 0.0  ;;  %v708_v54 = vmul.f32 %v1515_v48, %v1515_v48 }
 0x1ec   :  { %v700_v56 = vmul.f32 0.015625, %v686_v49  ;;  %v664_v57 = vpop.xlane.xlu0 %663  ;;  %v732_v34 = vsub.f32 %v1474_v45, %v1515_v48 }
 0x1ed   :  { %1267 = vrsqrt.f32 %v741_v51  ;;  %v742_v58 = vadd.f32 1e-05, %v726_v53  ;;  %v1524_v6 = vmul.f32 0.015625, %v664_v57 }
 0x1ee   :  { %v716_v59 = vsub.f32 %v700_v56, %v708_v54  ;;  %v666_v60 = vpop.xlane.xlu1 %665 }
 0x1ef   :  { %1269 = vrsqrt.f32 %v742_v58  ;;  %v1533_v10 = vmul.f32 0.015625, %v666_v60  ;;  %v713_v21 = vmul.f32 %v1524_v6, %v1524_v6 }
 0x1f0   :  { %v724_v61 = vmax.f32 %v716_v59, 0.0  ;;  %v660_v62 = vpop.xlane.xlu0 %659 }
 0x1f1   :  { %v1519_v63 = vmul.f32 0.015625, %v660_v62  ;;  %v714_v28 = vmul.f32 %v1533_v10, %v1533_v10 }
 0x1f2   :  { %v740_v0 = vadd.f32 1e-05, %v724_v61  ;;  %v662_v1 = vpop.xlane.xlu1 %661 }
 0x1f3   :  { %v1521_v2 = vmul.f32 0.015625, %v662_v1  ;;  %v711_v7 = vmul.f32 %v1519_v63, %v1519_v63  ;;  %v735_v57 = vsub.f32 %v1484_v50, %v1519_v63  ;;  %v737_v1 = vsub.f32 %v1480_v47, %v1524_v6 }
 0x1f4   :  { %1271 = vrsqrt.f32 %v740_v0  ;;  %v692_v4 = vpop.xlane.xlu0 %691  ;;  %v738_v50 = vsub.f32 %v1486_v52, %v1533_v10 }
 0x1f5   :  { %v1266_v5 = vpop.eup %1265  ;;  %v703_v8 = vmul.f32 0.015625, %v692_v4  ;;  %v712_v41 = vmul.f32 %v1521_v2, %v1521_v2  ;;  %v736_v60 = vsub.f32 %v1490_v55, %v1521_v2 }
 0x1f6   :  { %v694_v11 = vpop.xlane.xlu1 %693  ;;  %v755_v12 = vmul.f32 %v1266_v5, %v731_v3 }
 0x1f7   :  { %v1268_v13 = vpop.eup %1267  ;;  %v719_v14 = vsub.f32 %v703_v8, %v711_v7  ;;  %v704_v15 = vmul.f32 0.015625, %v694_v11 }
 0x1f8   :  { %v696_v18 = vpop.xlane.xlu0 %695  ;;  %v770_v19 = vmul.f32 %v1531_v9, %v755_v12  ;;  %v757_v39 = vmul.f32 %v1268_v13, %v733_v17 }
 0x1f9   :  { %v1270_v20 = vpop.eup %1269  ;;  %v727_v22 = vmax.f32 %v719_v14, 0.0  ;;  %v720_v23 = vsub.f32 %v704_v15, %v712_v41  ;;  %v705_v25 = vmul.f32 0.015625, %v696_v18  ;;  %v998_v15 = vld [vmem:[%s1600_s6] ss:$0 sm:$0xff]  ;;  %s1347_s6 = scalar_lea.vmem %s943_s23, 1024 }
 0x1fa   :  { %v698_v29 = vpop.xlane.xlu1 %697  ;;  %v785_v30 = vadd.f32 %v1540_v16, %v770_v19  ;;  %v758_v36 = vmul.f32 %v1270_v20, %v734_v26  ;;  %v772_v42 = vmul.f32 %v1531_v9, %v757_v39  ;;  %p1348_p10 = scmp.ne.s32.totalorder %s943_s23, %s1347_s6  ;;  %p1353_p12 = scmp.lt.s32.totalorder %s1347_s6, %s1347_s6 }
 0x1fb   :  { %v743_v24 = vadd.f32 1e-05, %v727_v22  ;;  %v728_v31 = vmax.f32 %v720_v23, 0.0  ;;  %v721_v32 = vsub.f32 %v705_v25, %v713_v21  ;;  %v706_v33 = vmul.f32 0.015625, %v698_v29 }
 0x1fc   :  { %v793_v35 = vmax.f32 %v785_v30, 0.0  ;;  %v773_v45 = vmul.f32 %v1531_v9, %v758_v36  ;;  %v787_v48 = vadd.f32 %v1540_v16, %v772_v42  ;;  %p1354_p13 = por %p1353_p12, %p1352_p11 }
 0x1fd   :  { %1273 = vrsqrt.f32 %v743_v24  ;;  %v744_v38 = vadd.f32 1e-05, %v728_v31  ;;  %v729_v40 = vmax.f32 %v721_v32, 0.0  ;;  %v722_v43 = vsub.f32 %v706_v33, %v714_v28 }
 0x1fe   :  { %v1272_v27 = vpop.eup %1271  ;;  %1171 = vmatprep.mubr.f32.mxu1 %v793_v35  ;;  %v788_v56 = vadd.f32 %v1540_v16, %v773_v45  ;;  %v795_v58 = vmax.f32 %v787_v48, 0.0  ;;  %p1355_p0 = pnand %p1354_p13, %p1348_p10 }
 0x1ff   :  { %v756_v44 = vmul.f32 %v1272_v27, %v732_v34  ;;  %1275 = vrsqrt.f32 %v744_v38  ;;  %v745_v37 = vadd.f32 1e-05, %v729_v40  ;;  %v730_v46 = vmax.f32 %v722_v43, 0.0 }
 0x200   :  { %v796_v0 = vmax.f32 %v788_v56, 0.0 }
 0x201   :  { %1277 = vrsqrt.f32 %v745_v37  ;;  %v746_v49 = vadd.f32 1e-05, %v730_v46  ;;  %v771_v51 = vmul.f32 %v1531_v9, %v756_v44 }
 0x203   :  { %1279 = vrsqrt.f32 %v746_v49  ;;  %v786_v53 = vadd.f32 %v1540_v16, %v771_v51 }
 0x205   :  { %v794_v54 = vmax.f32 %v786_v53, 0.0 }
 0x207   :  { %v1274_v59 = vpop.eup %1273  ;;  %1172 = vmatmul.mubr.f32.vlgmr.msra.gmra.mrb[16].mxu1 %v794_v54 }
 0x208   :  { %1174 = vmatprep.mubr.f32.mxu1 %v795_v58  ;;  %v759_v61 = vmul.f32 %v1274_v59, %v735_v57 }
 0x209   :  { %v1276_v62 = vpop.eup %1275 }
 0x20a   :  { %v774_v3 = vmul.f32 %v1531_v9, %v759_v61  ;;  %v760_v4 = vmul.f32 %v1276_v62, %v736_v60 }
 0x20b   :  { %v1278_v5 = vpop.eup %1277  ;;  %1175 = vmatmul.mubr.f32.gmra.mrb[18].mxu1 %v796_v0 }
 0x20c   :  { %v789_v63 = vadd.f32 %v1540_v16, %v774_v3  ;;  %v775_v7 = vmul.f32 %v1531_v9, %v760_v4  ;;  %v761_v55 = vmul.f32 %v1278_v5, %v737_v1 }
 0x20d   :  { %v1280_v2 = vpop.eup %1279 }
 0x20e   :  { %v797_v8 = vmax.f32 %v789_v63, 0.0  ;;  %v790_v11 = vadd.f32 %v1540_v16, %v775_v7  ;;  %v776_v12 = vmul.f32 %v1531_v9, %v761_v55  ;;  %v762_v47 = vmul.f32 %v1280_v2, %v738_v50 }
 0x210   :  { %1177 = vmatprep.mubr.f32.mxu1 %v797_v8  ;;  %v798_v6 = vmax.f32 %v790_v11, 0.0  ;;  %v791_v13 = vadd.f32 %v1540_v16, %v776_v12  ;;  %v777_v41 = vmul.f32 %v1531_v9, %v762_v47 }
 0x212   :  { %1178 = vmatmul.mubr.f32.gmra.mrb[20].mxu1 %v798_v6  ;;  %v799_v52 = vmax.f32 %v791_v13, 0.0  ;;  %v792_v10 = vadd.f32 %v1540_v16, %v777_v41 }
 0x214   :  { %1180 = vmatprep.mubr.f32.mxu1 %v799_v52  ;;  %v800_v14 = vmax.f32 %v792_v10, 0.0 }
 0x216   :  { %1181 = vmatmul.mubr.f32.gmra.mrb[22].mxu1 %v800_v14 }
 0x2da   :  { %v1173_v17 = vpop.f32.mrb[16].mxu1 }
 0x2db   :  { %v896_v18 = vadd.f32 %v1173_v17, %v998_v15  ;;  %v890_v19 = vpop.f32.mrb[17].mxu1 }
 0x2dc   :  { %v891_v20 = vadd.f32 %v998_v15, %v890_v19 }
 0x2dd   :  { %930 = vst [vmem:[#allocation8 + $0x8] sm:$0xff] %v896_v18 }
 0x2de   :  { %929 = vst [vmem:[#allocation8] sm:$0xff] %v891_v20  ;;  %v1176_v21 = vpop.f32.mrb[18].mxu1 }
 0x2df   :  { %v906_v22 = vadd.f32 %v1176_v21, %v998_v15  ;;  %v900_v9 = vpop.f32.mrb[19].mxu1 }
 0x2e0   :  { %v901_v23 = vadd.f32 %v998_v15, %v900_v9 }
 0x2e1   :  { %932 = vst [vmem:[#allocation8 + $0x18] sm:$0xff] %v906_v22 }
 0x2e2   :  { %931 = vst [vmem:[#allocation8 + $0x10] sm:$0xff] %v901_v23 }
 0x2e5   :  { %v1179_v16 = vpop.f32.mrb[20].mxu1 }
 0x2e6   :  { %v916_v25 = vadd.f32 %v1179_v16, %v998_v15  ;;  %v910_v26 = vpop.f32.mrb[21].mxu1 }
 0x2e7   :  { %v911_v28 = vadd.f32 %v998_v15, %v910_v26 }
 0x2e8   :  { %934 = vst [vmem:[#allocation8 + $0x28] sm:$0xff] %v916_v25 }
 0x2e9   :  { %933 = vst [vmem:[#allocation8 + $0x20] sm:$0xff] %v911_v28  ;;  %v1182_v29 = vpop.f32.mrb[22].mxu1 }
 0x2ea   :  { %v926_v30 = vadd.f32 %v1182_v29, %v998_v15  ;;  %v920_v39 = vpop.f32.mrb[23].mxu1 }
 0x2eb   :  { %v921_v24 = vadd.f32 %v998_v15, %v920_v39 }
 0x2ec   :  { %936 = vst [vmem:[#allocation8 + $0x38] sm:$0xff] %v926_v30 }
 0x2ed   :  { %935 = vst [vmem:[#allocation8 + $0x30] sm:$0xff] %v921_v24 }
 0x2ee   :  { %1358 = shalt.err (!%p1355_p0)
}
 0x2ef   :  { %s1359_s25 = scalar_lea.hbm %s1601_s7, 1024 }
 0x2f0   :  { %p1360_p1 = scmp.ne.s32.totalorder %s1601_s7, %s1359_s25  ;;  %p1363_p2 = scmp.lt.u32.totalorder %s1359_s25, %s1601_s7 }
 0x2f2   :  { %p1365_p3 = pnand %p1363_p2, %p1360_p1 }
 0x2f4   :  { %1368 = shalt.err (!%p1365_p3)
}
 0x2f5   :  { %948 = dma.vmem_to_hbm [thread:$0]  %s943_s23, 1024, %s1601_s7, [#allocation4], %s1382_s0, %s1382_s0, %s1383_s15  }
 0x2f6   :  { %1373 = dma.done.wait [#allocation4], 1024  }
 0x2f7   :  { %1374 = vsyncadd [#allocation4], 4294966272 }
 0x2f8   :  { %952 = vsyncpa [#allocation3], 1 }
 0x2f9   :  { %953 = vsyncpa [#allocation6], 1 }
 0x2fa   :  { %954 = vsyncpa [#allocation4], 1 }

</bundles_post_ra>
